<compile_context>
chip_gen: v7x
topology: tpu7x:2x2x1
jax: 0.10.0
libtpu: 0.0.40
codegen_flags: <defaults>
</compile_context>

<pallas_src>
import functools
import math

import jax
import jax.numpy as jnp
from jax.experimental import pallas as pl
from jax.experimental.pallas import tpu as pltpu


def _delay_copy_kernel(x_ref, o_ref, copy_sems, *, row_chunks, t_start, t_out):
    """Pure DMA kernel: copy x[rows, t_start:t_start+t_out, :] -> o[rows].

    x_ref, o_ref live in HBM (memory_space=pl.ANY); the copy is done with
    strided HBM->HBM DMAs, one per (static) row chunk.  All DMAs are started
    before any is waited on so they can run concurrently.
    """
    copies = []
    for c, (r0, rn) in enumerate(row_chunks):
        cp = pltpu.make_async_copy(
            x_ref.at[pl.ds(r0, rn), pl.ds(t_start, t_out), :],
            o_ref.at[pl.ds(r0, rn), :, :],
            copy_sems.at[c],
        )
        cp.start()
        copies.append(cp)
    for cp in copies:
        cp.wait()


def delay_forward(x, delay, auto_shrink=False):
    """Equivalent of Delay(delay, auto_shrink=auto_shrink).forward(x)."""
    assert delay >= 0
    assert auto_shrink in {True, False, "centered", "lagging"}

    if (not auto_shrink) or delay == 0:
        # Identity — nothing to compute, nothing to move.
        return x

    assert x.ndim >= 3, "expected (N, C, T, ...) input"
    B, C, T = x.shape[0], x.shape[1], x.shape[2]
    spatial = x.shape[3:]
    S = math.prod(spatial) if spatial else 1

    if auto_shrink == "lagging":
        start, t_out = 0, T - delay
    else:  # True or "centered"
        start, t_out = delay, T - 2 * delay
    assert t_out > 0, "temporal dim too small for requested delay shrink"

    N = B * C
    xf = x.reshape(N, T, S)  # adjacent-dim merges: free (no data movement)

    itemsize = jnp.dtype(x.dtype).itemsize
    out_bytes = N * t_out * S * itemsize

    # Static row chunking: up to 8 concurrent DMAs, each >= ~1 MiB when the
    # problem is large enough; tiny problems use a single DMA.
    n_chunks = int(min(8, N, max(1, out_bytes // (1 << 20))))
    base, rem = divmod(N, n_chunks)
    row_chunks = []
    r0 = 0
    for c in range(n_chunks):
        rn = base + (1 if c < rem else 0)
        if rn > 0:
            row_chunks.append((r0, rn))
        r0 += rn
    n_chunks = len(row_chunks)

    kernel = functools.partial(
        _delay_copy_kernel,
        row_chunks=tuple(row_chunks),
        t_start=start,
        t_out=t_out,
    )

    out = pl.pallas_call(
        kernel,
        out_shape=jax.ShapeDtypeStruct((N, t_out, S), x.dtype),
        in_specs=[pl.BlockSpec(memory_space=pl.ANY)],
        out_specs=pl.BlockSpec(memory_space=pl.ANY),
        scratch_shapes=[pltpu.SemaphoreType.DMA((n_chunks,))],
        cost_estimate=pl.CostEstimate(
            flops=0, transcendentals=0, bytes_accessed=int(2 * out_bytes)
        ),
    )(xf)

    return out.reshape((B, C, t_out) + spatial)


if __name__ == "__main__":
    key = jax.random.PRNGKey(0)
    B, C, T, S = 2, 4, 16, 16
    delay = 2
    x = jax.random.normal(key, (B, C, T, S), dtype=jnp.float32)

    # centered / True shrink
    y_centered = delay_forward(x, delay, auto_shrink=True)
    jax.block_until_ready(y_centered)
    ref_centered = x[:, :, delay:-delay]
    assert y_centered.shape == (B, C, T - 2 * delay, S)
    assert jnp.array_equal(y_centered, ref_centered)

    # lagging shrink
    y_lagging = delay_forward(x, delay, auto_shrink="lagging")
    jax.block_until_ready(y_lagging)
    ref_lagging = x[:, :, :-delay]
    assert y_lagging.shape == (B, C, T - delay, S)
    assert jnp.array_equal(y_lagging, ref_lagging)

    # identity (auto_shrink=False)
    y_identity = delay_forward(x, delay, auto_shrink=False)
    jax.block_until_ready(y_identity)
    assert jnp.array_equal(y_identity, x)

    # delay == 0 is also identity
    y_zero = delay_forward(x, 0, auto_shrink=True)
    jax.block_until_ready(y_zero)
    assert jnp.array_equal(y_zero, x)

    # arbitrary trailing spatial dims (like the PyTorch module accepts)
    x5 = jax.random.normal(key, (2, 3, 10, 4, 4), dtype=jnp.float32)
    y5 = delay_forward(x5, 1, auto_shrink="centered")
    jax.block_until_ready(y5)
    assert y5.shape == (2, 3, 8, 4, 4)
    assert jnp.array_equal(y5, x5[:, :, 1:-1])

    print("KERNEL_OK")
</pallas_src>

<mosaic_0001>
module attributes {stable_mosaic.version = 11 : i64} {
  func.func @_delay_copy_kernel(%arg0: memref<8x16x16xf32, #tpu.memory_space<any>>, %arg1: memref<8x12x16xf32, #tpu.memory_space<any>>, %arg2: memref<1x!tpu.dma_semaphore, #tpu.memory_space<semaphore_mem>>) attributes {dimension_semantics = [], scalar_prefetch = 0 : i64, scratch_operands = 1 : i64, tpu.core_type = #tpu.core_type<tc>} {
    %c0_i32 = arith.constant 0 : i32
    %c0_i32_0 = arith.constant 0 : i32
    %c2_i32 = arith.constant 2 : i32
    %c0_i32_1 = arith.constant 0 : i32
    %0 = tpu.memref_slice %arg0[%c0_i32_0, %c2_i32, %c0_i32_1] : memref<8x16x16xf32, #tpu.memory_space<any>> -> memref<8x12x16xf32, #tpu.memory_space<any>>
    %c0_i32_2 = arith.constant 0 : i32
    %c0_i32_3 = arith.constant 0 : i32
    %c0_i32_4 = arith.constant 0 : i32
    %1 = tpu.memref_slice %arg1[%c0_i32_2, %c0_i32_3, %c0_i32_4] : memref<8x12x16xf32, #tpu.memory_space<any>> -> memref<8x12x16xf32, #tpu.memory_space<any>>
    %2 = tpu.memref_slice %arg2[%c0_i32] : memref<1x!tpu.dma_semaphore, #tpu.memory_space<semaphore_mem>> -> memref<1x!tpu.dma_semaphore, #tpu.memory_space<semaphore_mem>>
    %3 = tpu.memref_squeeze %2 : memref<1x!tpu.dma_semaphore, #tpu.memory_space<semaphore_mem>> -> memref<!tpu.dma_semaphore, #tpu.memory_space<semaphore_mem>>
    tpu.enqueue_dma source(%0 : memref<8x12x16xf32, #tpu.memory_space<any>>) target(%1 : memref<8x12x16xf32, #tpu.memory_space<any>>) target_semaphore(%3 : memref<!tpu.dma_semaphore, #tpu.memory_space<semaphore_mem>>)
    %c0_i32_5 = arith.constant 0 : i32
    %c0_i32_6 = arith.constant 0 : i32
    %c2_i32_7 = arith.constant 2 : i32
    %c0_i32_8 = arith.constant 0 : i32
    %4 = tpu.memref_slice %arg0[%c0_i32_6, %c2_i32_7, %c0_i32_8] : memref<8x16x16xf32, #tpu.memory_space<any>> -> memref<8x12x16xf32, #tpu.memory_space<any>>
    %c0_i32_9 = arith.constant 0 : i32
    %c0_i32_10 = arith.constant 0 : i32
    %c0_i32_11 = arith.constant 0 : i32
    %5 = tpu.memref_slice %arg1[%c0_i32_9, %c0_i32_10, %c0_i32_11] : memref<8x12x16xf32, #tpu.memory_space<any>> -> memref<8x12x16xf32, #tpu.memory_space<any>>
    %6 = tpu.memref_slice %arg2[%c0_i32_5] : memref<1x!tpu.dma_semaphore, #tpu.memory_space<semaphore_mem>> -> memref<1x!tpu.dma_semaphore, #tpu.memory_space<semaphore_mem>>
    %7 = tpu.memref_squeeze %6 : memref<1x!tpu.dma_semaphore, #tpu.memory_space<semaphore_mem>> -> memref<!tpu.dma_semaphore, #tpu.memory_space<semaphore_mem>>
    tpu.wait_dma2 semaphore(%7 : memref<!tpu.dma_semaphore, #tpu.memory_space<semaphore_mem>>) src(%4 : memref<8x12x16xf32, #tpu.memory_space<any>>) dst(%5 : memref<8x12x16xf32, #tpu.memory_space<any>>)
    return
  }
}

</mosaic_0001>

<bundles_post_ra>
// kernel: tpu_custom_call.1
= control target key start
LH: loop header
LB: loop body
LE: loop exit
PB: predicated region body
PF: predicated region fallthrough
CT: control target
= control target key end

     0   :  { %s79_s0 = inlined_call_operand.hbm [shape: f32[8,16,16], index: 0, kind: input, shape index: {}]   ;;  %s80_s1 = inlined_call_operand.vmem [shape: f32[8,12,16], index: 1, kind: output, shape index: {}]  }
   0x1   :  { %s6_s8 = scalar_lea.hbm %s79_s0, 32  ;;  %s8_s11 = sshll.u32 %s80_s1, 4  ;;  %s9_s11 = int_to_ptr.vmem [resolvable:$true] %s8_s11 }
   0x2   :  { %s49_s14 = scalar_lea.hbm %s79_s0, 1568  ;;  %s27_s17 = scalar_lea.hbm %s79_s0, 2048 }
   0x3   :  { %p26_p0 = scmp.ne.s32.totalorder %s6_s8, %s49_s14  ;;  %p28_p1 = scmp.lt.u32.totalorder %s6_s8, %s79_s0 }
   0x4   :  { %p29_p2 = scmp.lt.u32.totalorder %s27_s17, %s49_s14  ;;  %p31_p4 = scmp.lt.u32.totalorder %s49_s14, %s6_s8 }
   0x6   :  { %p30_p3 = por %p29_p2, %p28_p1 }
   0x8   :  { %p32_p5 = por %p31_p4, %p30_p3 }
   0xa   :  { %p33_p6 = pnand %p32_p5, %p26_p0 }
   0xc   :  { %36 = shalt.err (!%p33_p6)  }
   0xd   :  { %s37_s1 = scalar_lea.vmem %s9_s11, 1536  ;;  %s41_s20 = scalar_lea.vmem %s9_s11, 2048 }
   0xe   :  { %p38_p7 = scmp.ne.s32.totalorder %s9_s11, %s37_s1  ;;  %p42_p8 = scmp.lt.s32.totalorder %s9_s11, %s9_s11 }
   0xf   :  { %p43_p9 = scmp.lt.s32.totalorder %s41_s20, %s37_s1 }
  0x11   :  { %p44_p10 = por %p43_p9, %p42_p8 }
  0x13   :  { %p45_p11 = pnand %p44_p10, %p38_p7 }
  0x15   :  { %48 = shalt.err (!%p45_p11)  }
  0x16   :  { %s52_s21 = smov 256   ;;  %s53_s22 = smov 12  }
  0x17   :  { %11 = dma.hbm_to_vmem [thread:$0]  %s6_s8, 1536, %s9_s11, [#allocation2], %s52_s21, %s52_s21, %s53_s22 }
  0x18   :  { %50 = dma.done.wait [#allocation2], 1536 }
  0x19   :  { %51 = vsyncadd [#allocation2], 4294965760 }
  0x1a   :  { %16 = vsyncmov [#allocation2] }
  0x1d   :  { %s17_s0 = vpop.sfrf %16 }
  0x1e   :  { %p22_p12 = scmp.ne.s32.totalorder %s17_s0, 0 }
  0x20   :  { %21 = shalt.err (%p22_p12)  }

</bundles_post_ra>
